<compile_context>
chip_gen: v6e
topology: v6e:2x2x1
jax: 0.10.0
libtpu: 0.0.40
codegen_flags: <defaults>
</compile_context>

<pallas_src>
import jax
import jax.numpy as jnp
from jax.experimental import pallas as pl
from jax.experimental.pallas import tpu as pltpu
from jax.scipy.linalg import block_diag


# ------------------------------- Model config -------------------------------

INPUT_SIZE = [[4, 6, 8], [4, 6, 8]]   # 2 groups x 3 subgroups (feature attn uses 3)
HIDDEN = 32
OUTPUT = 6
GROUP_NUM = len(INPUT_SIZE)           # dependency-attention group_num


# ------------------------------ Pallas kernel --------------------------------

def _fused_mlp_kernel(x_ref, *refs):
    """Whole forward pass: chain of dot + bias (+ ReLU except last layer)."""
    o_ref = refs[-1]
    wb = refs[:-1]
    n_layers = len(wb) // 2
    h = x_ref[...]
    for i in range(n_layers):
        w = wb[2 * i][...]
        b = wb[2 * i + 1][...]
        h = jnp.dot(h, w, preferred_element_type=jnp.float32) + b
        if i < n_layers - 1:
            h = jnp.maximum(h, 0.0)
    o_ref[...] = h.astype(o_ref.dtype)


def fused_forward(x, layers):
    """layers: list of (W, b) pairs (already fused); x: (B, total_features)."""
    B, F = x.shape
    out_dim = layers[-1][0].shape[1]

    # Row tile: whole batch if small; otherwise tile by 1024 rows (mult. of 8)
    # so the kernel still works / pipelines at realistic batch sizes.
    tb = B if B <= 1024 else 1024
    grid = (pl.cdiv(B, tb),)

    operands, w_specs = [], []
    for (w, b) in layers:
        operands += [w, b]
        # Constant index_map -> weights are DMA'd once and stay VMEM-resident
        # across all batch-grid steps.
        w_specs += [pl.BlockSpec(w.shape, lambda i: (0, 0)),
                    pl.BlockSpec(b.shape, lambda i: (0, 0))]

    return pl.pallas_call(
        _fused_mlp_kernel,
        out_shape=jax.ShapeDtypeStruct((B, out_dim), jnp.float32),
        grid=grid,
        in_specs=[pl.BlockSpec((tb, F), lambda i: (i, 0))] + w_specs,
        out_specs=pl.BlockSpec((tb, out_dim), lambda i: (i, 0)),
        compiler_params=pltpu.CompilerParams(
            dimension_semantics=("parallel",)),
    )(x, *operands)


# --------------------------- Parameter creation -----------------------------

def init_linear(key, fan_in, fan_out):
    kw, kb = jax.random.split(key)
    bound = 1.0 / (fan_in ** 0.5)
    w = jax.random.uniform(kw, (fan_in, fan_out), jnp.float32, -bound, bound)
    b = jax.random.uniform(kb, (1, fan_out), jnp.float32, -bound, bound)
    return w, b


def init_attention(key, input_dim, group_num, multi_head):
    keys = jax.random.split(key, 2 * multi_head + 1)
    heads = []
    for i in range(multi_head):
        wv, bv = init_linear(keys[2 * i], input_dim, input_dim)
        logits = jax.random.normal(keys[2 * i + 1], (1, group_num), jnp.float32)
        heads.append((wv, bv, logits))
    wf, bf = init_linear(keys[-1], input_dim * multi_head, input_dim)
    return {"heads": heads, "final": (wf, bf)}


def init_model(key):
    ks = jax.random.split(key, 7)
    mlps = [init_linear(jax.random.fold_in(ks[0], j), INPUT_SIZE[0][j], HIDDEN)
            for j in range(len(INPUT_SIZE[0]))]
    feat_attn = init_attention(ks[1], HIDDEN, 3, 2)
    dep_attn = init_attention(ks[2], HIDDEN, GROUP_NUM, 3)
    final = [init_linear(ks[3], HIDDEN, HIDDEN),
             init_linear(ks[4], HIDDEN, 32),
             init_linear(ks[5], 32, 16),
             init_linear(ks[6], 16, OUTPUT)]
    return {"mlps": mlps, "feat": feat_attn, "dep": dep_attn, "final": final}


# ----------------------- Fuse params into a layer chain ----------------------

def _attn_value_block(heads, n_groups):
    """Fold softmax(logits) into the W_v blocks of a CustomAttention.

    Returns (W, b) with W of shape (n_groups*H, n_heads*H) such that for an
    input [h_0 | ... | h_{G-1}] (concatenated along features),
        relu(x @ W + b)
    equals the concatenation over heads of
        relu(sum_g softmax(logits_i)[g] * (h_g @ Wv_i + bv_i)).
    (Exact because softmax weights sum to 1, so the bias hoists.)
    """
    cols, bias = [], []
    for (wv, bv, logits) in heads:
        sw = jax.nn.softmax(logits[0])                       # (n_groups,)
        cols.append(jnp.concatenate([sw[g] * wv for g in range(n_groups)],
                                    axis=0))                 # (G*H, H)
        bias.append(bv)
    return jnp.concatenate(cols, axis=1), jnp.concatenate(bias, axis=1)


def fuse_params(params):
    G = len(INPUT_SIZE)            # 2 groups
    S = len(INPUT_SIZE[0])         # 3 subgroups

    # 1) per-subgroup MLPs (same weights reused by both groups) -> (36, 192)
    sub_ws = [w for (w, _) in params["mlps"]]
    sub_bs = [b for (_, b) in params["mlps"]]
    W1 = block_diag(*(sub_ws * G))
    b1 = jnp.concatenate(sub_bs * G, axis=1)

    # 2) feature-attention heads (softmax folded into Wv), per group -> (192, 128)
    Wfa, bfa = _attn_value_block(params["feat"]["heads"], S)     # (96, 64)
    W2 = block_diag(*([Wfa] * G))
    b2 = jnp.concatenate([bfa] * G, axis=1)

    # 3) feature-attention final_mlp, per group -> (128, 64)
    wf_feat, bf_feat = params["feat"]["final"]                   # (64, 32)
    W3 = block_diag(*([wf_feat] * G))
    b3 = jnp.concatenate([bf_feat] * G, axis=1)

    # 4) dependency-attention heads -> (64, 96)
    W4, b4 = _attn_value_block(params["dep"]["heads"], G)

    # 5) dependency-attention final_mlp -> (96, 32)
    W5, b5 = params["dep"]["final"]

    layers = [(W1, b1), (W2, b2), (W3, b3), (W4, b4), (W5, b5)]
    layers += list(params["final"])          # 32->32, 32->32, 32->16, 16->6
    return layers


# --------------------------- Pure-JAX reference ------------------------------
# Implements the ORIGINAL (unfused) PyTorch math for correctness checking.

def _ref_attention(x3d, attn):
    outs = []
    for (wv, bv, lg) in attn["heads"]:
        v = jnp.einsum("bgh,hk->bgk", x3d, wv) + bv[0]
        w = jax.nn.softmax(lg[0])
        outs.append(jax.nn.relu(jnp.sum(v * w[None, :, None], axis=1)))
    cat = jnp.concatenate(outs, axis=1)
    wf, bf = attn["final"]
    return jax.nn.relu(cat @ wf + bf[0])


def _ref_forward(x, params):
    deps = []
    start = 0
    for group in INPUT_SIZE:
        outs = []
        for j, sz in enumerate(group):
            w, b = params["mlps"][j]
            outs.append(jax.nn.relu(x[:, start:start + sz] @ w + b[0]))
            start += sz
        deps.append(_ref_attention(jnp.stack(outs, axis=1), params["feat"]))
    h = _ref_attention(jnp.stack(deps, axis=1), params["dep"])
    (w1, b1), (w2, b2), (w3, b3), (w4, b4) = params["final"]
    h = jax.nn.relu(h @ w1 + b1[0])
    h = jax.nn.relu(h @ w2 + b2[0])
    h = jax.nn.relu(h @ w3 + b3[0])
    return h @ w4 + b4[0]


# ----------------------------------- Main ------------------------------------

if __name__ == "__main__":
    B = 2
    total_features = sum(sum(g) for g in INPUT_SIZE)   # 36
    x = jax.random.normal(jax.random.PRNGKey(0), (B, total_features), jnp.float32)
    params = init_model(jax.random.PRNGKey(42))

    # Fuse weights once (block-diagonals + softmax folding); re-used every call.
    fused_layers = fuse_params(params)

    fwd = jax.jit(fused_forward)
    out = fwd(x, fused_layers)
    jax.block_until_ready(out)
    assert out.shape == (B, OUTPUT), out.shape

    ref = _ref_forward(x, params)
    assert jnp.allclose(out, ref, rtol=2e-3, atol=2e-3), (out, ref)

    print("KERNEL_OK")
</pallas_src>

<mosaic_0001>
module attributes {stable_mosaic.version = 11 : i64} {
  func.func @_fused_mlp_kernel(%arg0: i32, %arg1: memref<2x36xf32, #tpu.memory_space<vmem>>, %arg2: memref<36x192xf32, #tpu.memory_space<vmem>>, %arg3: memref<1x192xf32, #tpu.memory_space<vmem>>, %arg4: memref<192x128xf32, #tpu.memory_space<vmem>>, %arg5: memref<1x128xf32, #tpu.memory_space<vmem>>, %arg6: memref<128x64xf32, #tpu.memory_space<vmem>>, %arg7: memref<1x64xf32, #tpu.memory_space<vmem>>, %arg8: memref<64x96xf32, #tpu.memory_space<vmem>>, %arg9: memref<1x96xf32, #tpu.memory_space<vmem>>, %arg10: memref<96x32xf32, #tpu.memory_space<vmem>>, %arg11: memref<1x32xf32, #tpu.memory_space<vmem>>, %arg12: memref<32x32xf32, #tpu.memory_space<vmem>>, %arg13: memref<1x32xf32, #tpu.memory_space<vmem>>, %arg14: memref<32x32xf32, #tpu.memory_space<vmem>>, %arg15: memref<1x32xf32, #tpu.memory_space<vmem>>, %arg16: memref<32x16xf32, #tpu.memory_space<vmem>>, %arg17: memref<1x16xf32, #tpu.memory_space<vmem>>, %arg18: memref<16x6xf32, #tpu.memory_space<vmem>>, %arg19: memref<1x6xf32, #tpu.memory_space<vmem>>, %arg20: memref<2x6xf32, #tpu.memory_space<vmem>>) attributes {dimension_semantics = [#tpu.dimension_semantics<parallel>], iteration_bounds = array<i64: 1>, scalar_prefetch = 0 : i64, scratch_operands = 0 : i64, tpu.core_type = #tpu.core_type<tc>, window_params = [{transform_indices = @transform_0, window_bounds = array<i64: 2, 36>}, {pipeline_mode = #tpu.pipeline_mode<synchronous>, transform_indices = @transform_1, window_bounds = array<i64: 36, 192>}, {pipeline_mode = #tpu.pipeline_mode<synchronous>, transform_indices = @transform_2, window_bounds = array<i64: 1, 192>}, {pipeline_mode = #tpu.pipeline_mode<synchronous>, transform_indices = @transform_3, window_bounds = array<i64: 192, 128>}, {pipeline_mode = #tpu.pipeline_mode<synchronous>, transform_indices = @transform_4, window_bounds = array<i64: 1, 128>}, {pipeline_mode = #tpu.pipeline_mode<synchronous>, transform_indices = @transform_5, window_bounds = array<i64: 128, 64>}, {pipeline_mode = #tpu.pipeline_mode<synchronous>, transform_indices = @transform_6, window_bounds = array<i64: 1, 64>}, {pipeline_mode = #tpu.pipeline_mode<synchronous>, transform_indices = @transform_7, window_bounds = array<i64: 64, 96>}, {pipeline_mode = #tpu.pipeline_mode<synchronous>, transform_indices = @transform_8, window_bounds = array<i64: 1, 96>}, {pipeline_mode = #tpu.pipeline_mode<synchronous>, transform_indices = @transform_9, window_bounds = array<i64: 96, 32>}, {pipeline_mode = #tpu.pipeline_mode<synchronous>, transform_indices = @transform_10, window_bounds = array<i64: 1, 32>}, {pipeline_mode = #tpu.pipeline_mode<synchronous>, transform_indices = @transform_11, window_bounds = array<i64: 32, 32>}, {pipeline_mode = #tpu.pipeline_mode<synchronous>, transform_indices = @transform_12, window_bounds = array<i64: 1, 32>}, {pipeline_mode = #tpu.pipeline_mode<synchronous>, transform_indices = @transform_13, window_bounds = array<i64: 32, 32>}, {pipeline_mode = #tpu.pipeline_mode<synchronous>, transform_indices = @transform_14, window_bounds = array<i64: 1, 32>}, {pipeline_mode = #tpu.pipeline_mode<synchronous>, transform_indices = @transform_15, window_bounds = array<i64: 32, 16>}, {pipeline_mode = #tpu.pipeline_mode<synchronous>, transform_indices = @transform_16, window_bounds = array<i64: 1, 16>}, {pipeline_mode = #tpu.pipeline_mode<synchronous>, transform_indices = @transform_17, window_bounds = array<i64: 16, 6>}, {pipeline_mode = #tpu.pipeline_mode<synchronous>, transform_indices = @transform_18, window_bounds = array<i64: 1, 6>}, {transform_indices = @transform_19, window_bounds = array<i64: 2, 6>}]} {
    %c0 = arith.constant 0 : index
    %c0_0 = arith.constant 0 : index
    %0 = vector.load %arg1[%c0, %c0_0] : memref<2x36xf32, #tpu.memory_space<vmem>>, vector<2x36xf32>
    %c0_1 = arith.constant 0 : index
    %c0_2 = arith.constant 0 : index
    %1 = vector.load %arg2[%c0_1, %c0_2] : memref<36x192xf32, #tpu.memory_space<vmem>>, vector<36x192xf32>
    %c0_3 = arith.constant 0 : index
    %c0_4 = arith.constant 0 : index
    %2 = vector.load %arg3[%c0_3, %c0_4] : memref<1x192xf32, #tpu.memory_space<vmem>>, vector<1x192xf32>
    %cst = arith.constant dense<0.000000e+00> : vector<2x192xf32>
    %3 = tpu.matmul %0, %1, %cst {dimension_numbers = #tpu.dot_dimension_numbers<[1], [0], [0], [1], [0, 0, 1, 1], [], []>} : vector<2x36xf32>, vector<36x192xf32>, vector<2x192xf32> -> vector<2x192xf32>
    %4 = vector.broadcast %2 : vector<1x192xf32> to vector<2x192xf32>
    %5 = arith.addf %3, %4 : vector<2x192xf32>
    %cst_5 = arith.constant 0.000000e+00 : f32
    %6 = vector.broadcast %cst_5 : f32 to vector<2x192xf32>
    %7 = arith.maximumf %5, %6 : vector<2x192xf32>
    %c0_6 = arith.constant 0 : index
    %c0_7 = arith.constant 0 : index
    %8 = vector.load %arg4[%c0_6, %c0_7] : memref<192x128xf32, #tpu.memory_space<vmem>>, vector<192x128xf32>
    %c0_8 = arith.constant 0 : index
    %c0_9 = arith.constant 0 : index
    %9 = vector.load %arg5[%c0_8, %c0_9] : memref<1x128xf32, #tpu.memory_space<vmem>>, vector<1x128xf32>
    %cst_10 = arith.constant dense<0.000000e+00> : vector<2x128xf32>
    %10 = tpu.matmul %7, %8, %cst_10 {dimension_numbers = #tpu.dot_dimension_numbers<[1], [0], [0], [1], [0, 0, 1, 1], [], []>} : vector<2x192xf32>, vector<192x128xf32>, vector<2x128xf32> -> vector<2x128xf32>
    %11 = vector.broadcast %9 : vector<1x128xf32> to vector<2x128xf32>
    %12 = arith.addf %10, %11 : vector<2x128xf32>
    %cst_11 = arith.constant 0.000000e+00 : f32
    %13 = vector.broadcast %cst_11 : f32 to vector<2x128xf32>
    %14 = arith.maximumf %12, %13 : vector<2x128xf32>
    %c0_12 = arith.constant 0 : index
    %c0_13 = arith.constant 0 : index
    %15 = vector.load %arg6[%c0_12, %c0_13] : memref<128x64xf32, #tpu.memory_space<vmem>>, vector<128x64xf32>
    %c0_14 = arith.constant 0 : index
    %c0_15 = arith.constant 0 : index
    %16 = vector.load %arg7[%c0_14, %c0_15] : memref<1x64xf32, #tpu.memory_space<vmem>>, vector<1x64xf32>
    %cst_16 = arith.constant dense<0.000000e+00> : vector<2x64xf32>
    %17 = tpu.matmul %14, %15, %cst_16 {dimension_numbers = #tpu.dot_dimension_numbers<[1], [0], [0], [1], [0, 0, 1, 1], [], []>} : vector<2x128xf32>, vector<128x64xf32>, vector<2x64xf32> -> vector<2x64xf32>
    %18 = vector.broadcast %16 : vector<1x64xf32> to vector<2x64xf32>
    %19 = arith.addf %17, %18 : vector<2x64xf32>
    %cst_17 = arith.constant 0.000000e+00 : f32
    %20 = vector.broadcast %cst_17 : f32 to vector<2x64xf32>
    %21 = arith.maximumf %19, %20 : vector<2x64xf32>
    %c0_18 = arith.constant 0 : index
    %c0_19 = arith.constant 0 : index
    %22 = vector.load %arg8[%c0_18, %c0_19] : memref<64x96xf32, #tpu.memory_space<vmem>>, vector<64x96xf32>
    %c0_20 = arith.constant 0 : index
    %c0_21 = arith.constant 0 : index
    %23 = vector.load %arg9[%c0_20, %c0_21] : memref<1x96xf32, #tpu.memory_space<vmem>>, vector<1x96xf32>
    %cst_22 = arith.constant dense<0.000000e+00> : vector<2x96xf32>
    %24 = tpu.matmul %21, %22, %cst_22 {dimension_numbers = #tpu.dot_dimension_numbers<[1], [0], [0], [1], [0, 0, 1, 1], [], []>} : vector<2x64xf32>, vector<64x96xf32>, vector<2x96xf32> -> vector<2x96xf32>
    %25 = vector.broadcast %23 : vector<1x96xf32> to vector<2x96xf32>
    %26 = arith.addf %24, %25 : vector<2x96xf32>
    %cst_23 = arith.constant 0.000000e+00 : f32
    %27 = vector.broadcast %cst_23 : f32 to vector<2x96xf32>
    %28 = arith.maximumf %26, %27 : vector<2x96xf32>
    %c0_24 = arith.constant 0 : index
    %c0_25 = arith.constant 0 : index
    %29 = vector.load %arg10[%c0_24, %c0_25] : memref<96x32xf32, #tpu.memory_space<vmem>>, vector<96x32xf32>
    %c0_26 = arith.constant 0 : index
    %c0_27 = arith.constant 0 : index
    %30 = vector.load %arg11[%c0_26, %c0_27] : memref<1x32xf32, #tpu.memory_space<vmem>>, vector<1x32xf32>
    %cst_28 = arith.constant dense<0.000000e+00> : vector<2x32xf32>
    %31 = tpu.matmul %28, %29, %cst_28 {dimension_numbers = #tpu.dot_dimension_numbers<[1], [0], [0], [1], [0, 0, 1, 1], [], []>} : vector<2x96xf32>, vector<96x32xf32>, vector<2x32xf32> -> vector<2x32xf32>
    %32 = vector.broadcast %30 : vector<1x32xf32> to vector<2x32xf32>
    %33 = arith.addf %31, %32 : vector<2x32xf32>
    %cst_29 = arith.constant 0.000000e+00 : f32
    %34 = vector.broadcast %cst_29 : f32 to vector<2x32xf32>
    %35 = arith.maximumf %33, %34 : vector<2x32xf32>
    %c0_30 = arith.constant 0 : index
    %c0_31 = arith.constant 0 : index
    %36 = vector.load %arg12[%c0_30, %c0_31] : memref<32x32xf32, #tpu.memory_space<vmem>>, vector<32x32xf32>
    %c0_32 = arith.constant 0 : index
    %c0_33 = arith.constant 0 : index
    %37 = vector.load %arg13[%c0_32, %c0_33] : memref<1x32xf32, #tpu.memory_space<vmem>>, vector<1x32xf32>
    %cst_34 = arith.constant dense<0.000000e+00> : vector<2x32xf32>
    %38 = tpu.matmul %35, %36, %cst_34 {dimension_numbers = #tpu.dot_dimension_numbers<[1], [0], [0], [1], [0, 0, 1, 1], [], []>} : vector<2x32xf32>, vector<32x32xf32>, vector<2x32xf32> -> vector<2x32xf32>
    %39 = vector.broadcast %37 : vector<1x32xf32> to vector<2x32xf32>
    %40 = arith.addf %38, %39 : vector<2x32xf32>
    %cst_35 = arith.constant 0.000000e+00 : f32
    %41 = vector.broadcast %cst_35 : f32 to vector<2x32xf32>
    %42 = arith.maximumf %40, %41 : vector<2x32xf32>
    %c0_36 = arith.constant 0 : index
    %c0_37 = arith.constant 0 : index
    %43 = vector.load %arg14[%c0_36, %c0_37] : memref<32x32xf32, #tpu.memory_space<vmem>>, vector<32x32xf32>
    %c0_38 = arith.constant 0 : index
    %c0_39 = arith.constant 0 : index
    %44 = vector.load %arg15[%c0_38, %c0_39] : memref<1x32xf32, #tpu.memory_space<vmem>>, vector<1x32xf32>
    %cst_40 = arith.constant dense<0.000000e+00> : vector<2x32xf32>
    %45 = tpu.matmul %42, %43, %cst_40 {dimension_numbers = #tpu.dot_dimension_numbers<[1], [0], [0], [1], [0, 0, 1, 1], [], []>} : vector<2x32xf32>, vector<32x32xf32>, vector<2x32xf32> -> vector<2x32xf32>
    %46 = vector.broadcast %44 : vector<1x32xf32> to vector<2x32xf32>
    %47 = arith.addf %45, %46 : vector<2x32xf32>
    %cst_41 = arith.constant 0.000000e+00 : f32
    %48 = vector.broadcast %cst_41 : f32 to vector<2x32xf32>
    %49 = arith.maximumf %47, %48 : vector<2x32xf32>
    %c0_42 = arith.constant 0 : index
    %c0_43 = arith.constant 0 : index
    %50 = vector.load %arg16[%c0_42, %c0_43] : memref<32x16xf32, #tpu.memory_space<vmem>>, vector<32x16xf32>
    %c0_44 = arith.constant 0 : index
    %c0_45 = arith.constant 0 : index
    %51 = vector.load %arg17[%c0_44, %c0_45] : memref<1x16xf32, #tpu.memory_space<vmem>>, vector<1x16xf32>
    %cst_46 = arith.constant dense<0.000000e+00> : vector<2x16xf32>
    %52 = tpu.matmul %49, %50, %cst_46 {dimension_numbers = #tpu.dot_dimension_numbers<[1], [0], [0], [1], [0, 0, 1, 1], [], []>} : vector<2x32xf32>, vector<32x16xf32>, vector<2x16xf32> -> vector<2x16xf32>
    %53 = vector.broadcast %51 : vector<1x16xf32> to vector<2x16xf32>
    %54 = arith.addf %52, %53 : vector<2x16xf32>
    %cst_47 = arith.constant 0.000000e+00 : f32
    %55 = vector.broadcast %cst_47 : f32 to vector<2x16xf32>
    %56 = arith.maximumf %54, %55 : vector<2x16xf32>
    %c0_48 = arith.constant 0 : index
    %c0_49 = arith.constant 0 : index
    %57 = vector.load %arg18[%c0_48, %c0_49] : memref<16x6xf32, #tpu.memory_space<vmem>>, vector<16x6xf32>
    %c0_50 = arith.constant 0 : index
    %c0_51 = arith.constant 0 : index
    %58 = vector.load %arg19[%c0_50, %c0_51] : memref<1x6xf32, #tpu.memory_space<vmem>>, vector<1x6xf32>
    %cst_52 = arith.constant dense<0.000000e+00> : vector<2x6xf32>
    %59 = tpu.matmul %56, %57, %cst_52 {dimension_numbers = #tpu.dot_dimension_numbers<[1], [0], [0], [1], [0, 0, 1, 1], [], []>} : vector<2x16xf32>, vector<16x6xf32>, vector<2x6xf32> -> vector<2x6xf32>
    %60 = vector.broadcast %58 : vector<1x6xf32> to vector<2x6xf32>
    %61 = arith.addf %59, %60 : vector<2x6xf32>
    %c0_53 = arith.constant 0 : index
    %c0_54 = arith.constant 0 : index
    %62 = vector.load %arg20[%c0_53, %c0_54] : memref<2x6xf32, #tpu.memory_space<vmem>>, vector<2x6xf32>
    tpu.vector_store %arg20[%c0_53, %c0_54], %61 {strides = array<i32>} : memref<2x6xf32, #tpu.memory_space<vmem>>, vector<2x6xf32>,
    return
  }
  func.func @transform_0(%arg0: i32) -> (i32, i32) {
    %c0_i32 = arith.constant 0 : i32
    %c0_i32_0 = arith.constant 0 : i32
    return %arg0, %c0_i32 : i32, i32
  }
  func.func @transform_1(%arg0: i32) -> (i32, i32) {
    %c0_i32 = arith.constant 0 : i32
    %c0_i32_0 = arith.constant 0 : i32
    %c0_i32_1 = arith.constant 0 : i32
    return %c0_i32, %c0_i32_0 : i32, i32
  }
  func.func @transform_2(%arg0: i32) -> (i32, i32) {
    %c0_i32 = arith.constant 0 : i32
    %c0_i32_0 = arith.constant 0 : i32
    %c0_i32_1 = arith.constant 0 : i32
    return %c0_i32, %c0_i32_0 : i32, i32
  }
  func.func @transform_3(%arg0: i32) -> (i32, i32) {
    %c0_i32 = arith.constant 0 : i32
    %c0_i32_0 = arith.constant 0 : i32
    %c0_i32_1 = arith.constant 0 : i32
    return %c0_i32, %c0_i32_0 : i32, i32
  }
  func.func @transform_4(%arg0: i32) -> (i32, i32) {
    %c0_i32 = arith.constant 0 : i32
    %c0_i32_0 = arith.constant 0 : i32
    %c0_i32_1 = arith.constant 0 : i32
    return %c0_i32, %c0_i32_0 : i32, i32
  }
  func.func @transform_5(%arg0: i32) -> (i32, i32) {
    %c0_i32 = arith.constant 0 : i32
    %c0_i32_0 = arith.constant 0 : i32
    %c0_i32_1 = arith.constant 0 : i32
    return %c0_i32, %c0_i32_0 : i32, i32
  }
  func.func @transform_6(%arg0: i32) -> (i32, i32) {
    %c0_i32 = arith.constant 0 : i32
    %c0_i32_0 = arith.constant 0 : i32
    %c0_i32_1 = arith.constant 0 : i32
    return %c0_i32, %c0_i32_0 : i32, i32
  }
  func.func @transform_7(%arg0: i32) -> (i32, i32) {
    %c0_i32 = arith.constant 0 : i32
    %c0_i32_0 = arith.constant 0 : i32
    %c0_i32_1 = arith.constant 0 : i32
    return %c0_i32, %c0_i32_0 : i32, i32
  }
  func.func @transform_8(%arg0: i32) -> (i32, i32) {
    %c0_i32 = arith.constant 0 : i32
    %c0_i32_0 = arith.constant 0 : i32
    %c0_i32_1 = arith.constant 0 : i32
    return %c0_i32, %c0_i32_0 : i32, i32
  }
  func.func @transform_9(%arg0: i32) -> (i32, i32) {
    %c0_i32 = arith.constant 0 : i32
    %c0_i32_0 = arith.constant 0 : i32
    %c0_i32_1 = arith.constant 0 : i32
    return %c0_i32, %c0_i32_0 : i32, i32
  }
  func.func @transform_10(%arg0: i32) -> (i32, i32) {
    %c0_i32 = arith.constant 0 : i32
    %c0_i32_0 = arith.constant 0 : i32
    %c0_i32_1 = arith.constant 0 : i32
    return %c0_i32, %c0_i32_0 : i32, i32
  }
  func.func @transform_11(%arg0: i32) -> (i32, i32) {
    %c0_i32 = arith.constant 0 : i32
    %c0_i32_0 = arith.constant 0 : i32
    %c0_i32_1 = arith.constant 0 : i32
    return %c0_i32, %c0_i32_0 : i32, i32
  }
  func.func @transform_12(%arg0: i32) -> (i32, i32) {
    %c0_i32 = arith.constant 0 : i32
    %c0_i32_0 = arith.constant 0 : i32
    %c0_i32_1 = arith.constant 0 : i32
    return %c0_i32, %c0_i32_0 : i32, i32
  }
  func.func @transform_13(%arg0: i32) -> (i32, i32) {
    %c0_i32 = arith.constant 0 : i32
    %c0_i32_0 = arith.constant 0 : i32
    %c0_i32_1 = arith.constant 0 : i32
    return %c0_i32, %c0_i32_0 : i32, i32
  }
  func.func @transform_14(%arg0: i32) -> (i32, i32) {
    %c0_i32 = arith.constant 0 : i32
    %c0_i32_0 = arith.constant 0 : i32
    %c0_i32_1 = arith.constant 0 : i32
    return %c0_i32, %c0_i32_0 : i32, i32
  }
  func.func @transform_15(%arg0: i32) -> (i32, i32) {
    %c0_i32 = arith.constant 0 : i32
    %c0_i32_0 = arith.constant 0 : i32
    %c0_i32_1 = arith.constant 0 : i32
    return %c0_i32, %c0_i32_0 : i32, i32
  }
  func.func @transform_16(%arg0: i32) -> (i32, i32) {
    %c0_i32 = arith.constant 0 : i32
    %c0_i32_0 = arith.constant 0 : i32
    %c0_i32_1 = arith.constant 0 : i32
    return %c0_i32, %c0_i32_0 : i32, i32
  }
  func.func @transform_17(%arg0: i32) -> (i32, i32) {
    %c0_i32 = arith.constant 0 : i32
    %c0_i32_0 = arith.constant 0 : i32
    %c0_i32_1 = arith.constant 0 : i32
    return %c0_i32, %c0_i32_0 : i32, i32
  }
  func.func @transform_18(%arg0: i32) -> (i32, i32) {
    %c0_i32 = arith.constant 0 : i32
    %c0_i32_0 = arith.constant 0 : i32
    %c0_i32_1 = arith.constant 0 : i32
    return %c0_i32, %c0_i32_0 : i32, i32
  }
  func.func @transform_19(%arg0: i32) -> (i32, i32) {
    %c0_i32 = arith.constant 0 : i32
    %c0_i32_0 = arith.constant 0 : i32
    return %arg0, %c0_i32 : i32, i32
  }
}

</mosaic_0001>

<bundles_post_ra>
// kernel: fused_forward.1
= control target key start
LH: loop header
LB: loop body
LE: loop exit
PB: predicated region body
PF: predicated region fallthrough
CT: control target
= control target key end

     0   :  { %s1918_s0 = inlined_call_operand.hbm [shape: f32[2,36], index: 0, kind: input, shape index: {}]   ;;  %s1919_s1 = inlined_call_operand.vmem [shape: f32[36,192], index: 1, kind: input, shape index: {}]   ;;  %s1920_s2 = inlined_call_operand.hbm [shape: f32[1,192], index: 2, kind: input, shape index: {}]   ;;  %s1921_s3 = inlined_call_operand.vmem [shape: f32[192,128], index: 3, kind: input, shape index: {}]   ;;  %s1922_s4 = inlined_call_operand.vmem [shape: f32[1,128], index: 4, kind: input, shape index: {}]   ;;  %s1923_s5 = inlined_call_operand.vmem [shape: f32[128,64], index: 5, kind: input, shape index: {}]   ;;  %s1924_s6 = inlined_call_operand.hbm [shape: f32[1,64], index: 6, kind: input, shape index: {}]   ;;  %s1925_s7 = inlined_call_operand.vmem [shape: f32[64,96], index: 7, kind: input, shape index: {}]   ;;  %s1926_s8 = inlined_call_operand.hbm [shape: f32[1,96], index: 8, kind: input, shape index: {}]   ;;  %s1927_s9 = inlined_call_operand.vmem [shape: f32[96,32], index: 9, kind: input, shape index: {}]   ;;  %s1928_s10 = inlined_call_operand.hbm [shape: f32[1,32], index: 10, kind: input, shape index: {}]   ;;  %s1929_s11 = inlined_call_operand.hbm [shape: f32[32,32], index: 11, kind: input, shape index: {}]   ;;  %s1930_s12 = inlined_call_operand.hbm [shape: f32[1,32], index: 12, kind: input, shape index: {}]   ;;  %s1931_s13 = inlined_call_operand.hbm [shape: f32[32,32], index: 13, kind: input, shape index: {}]   ;;  %s1932_s14 = inlined_call_operand.hbm [shape: f32[1,32], index: 14, kind: input, shape index: {}]   ;;  %s1933_s15 = inlined_call_operand.vmem [shape: f32[32,16], index: 15, kind: input, shape index: {}]   ;;  %s1934_s16 = inlined_call_operand.vmem [shape: f32[1,16], index: 16, kind: input, shape index: {}]   ;;  %s1935_s17 = inlined_call_operand.vmem [shape: f32[16,6], index: 17, kind: input, shape index: {}]   ;;  %s1936_s18 = inlined_call_operand.vmem [shape: f32[1,6], index: 18, kind: input, shape index: {}]   ;;  %s1937_s19 = inlined_call_operand.hbm [shape: f32[2,6], index: 19, kind: output, shape index: {}]  }
   0x1   :  { %1940 = sst [smem:[#allocation24_spill]] %s1918_s0 }
   0x2   :  { %1941 = sst [smem:[#allocation25_spill]] %s1919_s1 }
   0x3   :  { %1942 = sst [smem:[#allocation26_spill]] %s1920_s2 }
   0x4   :  { %1943 = sst [smem:[#allocation27_spill]] %s1921_s3 }
   0x5   :  { %24 = vsyncpa [#allocation3], 0 }
   0x6   :  { %25 = vsyncpa [#allocation6], 0 }
   0x7   :  { %26 = vsyncpa [#allocation9], 0 }
   0x8   :  { %27 = vsyncpa [#allocation12], 0 }
   0x9   :  { %28 = vsyncpa [#allocation15], 0 }
   0xa   :  { %29 = vsyncpa [#allocation4], 0  ;;  %s1443_s0 = smov [#allocation5]   ;;  %s1444_s20 = smov [#allocation8]  }
   0xb   :  { %s48_s30 = sshll.u32 %s1443_s0, 4  ;;  %s76_s21 = sshll.u32 %s1444_s20, 4  ;;  %s49_s30 = int_to_ptr.vmem [resolvable:$true] %s48_s30  ;;  %s77_s21 = int_to_ptr.vmem [resolvable:$true] %s76_s21 }
   0xc   :  { %s1239_s1 = scalar_lea.vmem %s49_s30, 32  ;;  %p1244_p1 = scmp.lt.s32.totalorder %s49_s30, %s49_s30 }
   0xd   :  { %p1240_p0 = scmp.ne.s32.totalorder %s49_s30, %s1239_s1  ;;  %p1245_p2 = scmp.lt.s32.totalorder %s1239_s1, %s1239_s1 }
   0xf   :  { %p1246_p3 = por %p1245_p2, %p1244_p1 }
  0x11   :  { %p1247_p4 = pnand %p1246_p3, %p1240_p0 }
  0x13   :  { %1250 = shalt.err (!%p1247_p4)
}
  0x14   :  { %s1944_s23 = sld [smem:[#allocation26_spill]]  ;;  %s1259_s24 = scalar_lea.vmem %s77_s21, 16 }
  0x15   :  { %p1260_p5 = scmp.ne.s32.totalorder %s77_s21, %s1259_s24  ;;  %s1263_s25 = scalar_lea.vmem %s77_s21, 32 }
  0x16   :  { %p1264_p6 = scmp.lt.s32.totalorder %s77_s21, %s77_s21  ;;  %p1265_p7 = scmp.lt.s32.totalorder %s1263_s25, %s1259_s24 }
  0x18   :  { %p1266_p8 = por %p1265_p7, %p1264_p6 }
  0x1a   :  { %51 = dma.hbm_to_vmem [thread:$0]  %s1944_s23, 32, %s49_s30, [#allocation6]  }
  0x1b   :  { %p1267_p9 = pnand %p1266_p8, %p1260_p5 }
  0x1d   :  { %1270 = shalt.err (!%p1267_p9)
}
  0x1e   :  { %79 = dma.hbm_to_vmem [thread:$0]  %s1926_s8, 16, %s77_s21, [#allocation9]  }
  0x1f   :  { %s1445_s27 = smov [#allocation11]  }
  0x20   :  { %s97_s28 = sshll.u32 %s1445_s27, 4  ;;  %s98_s28 = int_to_ptr.vmem [resolvable:$true] %s97_s28 }
  0x21   :  { %s1279_s29 = scalar_lea.vmem %s98_s28, 512  ;;  %p1284_p11 = scmp.lt.s32.totalorder %s98_s28, %s98_s28 }
  0x22   :  { %p1280_p10 = scmp.ne.s32.totalorder %s98_s28, %s1279_s29  ;;  %p1285_p12 = scmp.lt.s32.totalorder %s1279_s29, %s1279_s29 }
  0x24   :  { %p1286_p13 = por %p1285_p12, %p1284_p11 }
  0x26   :  { %p1287_p0 = pnand %p1286_p13, %p1280_p10 }
  0x28   :  { %1290 = shalt.err (!%p1287_p0)
}
  0x29   :  { %s1446_s0 = smov 128   ;;  %s1447_s30 = smov 8  }
  0x2a   :  { %103 = dma.hbm_to_vmem [thread:$0]  %s1929_s11, 512, %s98_s28, [#allocation12], %s1446_s0, %s1446_s0, %s1447_s30  }
  0x2b   :  { %s1448_s22 = smov [#allocation14]   ;;  %s1449_s8 = smov [#allocation2]  }
  0x2c   :  { %s119_s2 = sshll.u32 %s1448_s22, 4  ;;  %s36_s21 = sshll.u32 %s1449_s8, 4  ;;  %s120_s2 = int_to_ptr.vmem [resolvable:$true] %s119_s2  ;;  %s37_s21 = int_to_ptr.vmem [resolvable:$true] %s36_s21 }
  0x2d   :  { %s1299_s23 = scalar_lea.vmem %s120_s2, 512  ;;  %p1304_p2 = scmp.lt.s32.totalorder %s120_s2, %s120_s2 }
  0x2e   :  { %p1300_p1 = scmp.ne.s32.totalorder %s120_s2, %s1299_s23  ;;  %p1305_p3 = scmp.lt.s32.totalorder %s1299_s23, %s1299_s23 }
  0x30   :  { %p1306_p4 = por %p1305_p3, %p1304_p2 }
  0x32   :  { %p1307_p5 = pnand %p1306_p4, %p1300_p1 }
  0x34   :  { %1310 = shalt.err (!%p1307_p5)
}
  0x35   :  { %125 = dma.hbm_to_vmem [thread:$0]  %s1931_s13, 512, %s120_s2, [#allocation15], %s1446_s0, %s1446_s0, %s1447_s30  }
  0x36   :  { %s1319_s3 = scalar_lea.vmem %s37_s21, 32  ;;  %p1324_p7 = scmp.lt.s32.totalorder %s37_s21, %s37_s21 }
  0x37   :  { %p1320_p6 = scmp.ne.s32.totalorder %s37_s21, %s1319_s3  ;;  %p1325_p8 = scmp.lt.s32.totalorder %s1319_s3, %s1319_s3 }
  0x39   :  { %p1326_p9 = por %p1325_p8, %p1324_p7 }
  0x3b   :  { %p1327_p10 = pnand %p1326_p9, %p1320_p6 }
  0x3d   :  { %1330 = shalt.err (!%p1327_p10)
}
  0x3e   :  { %s1945_s27 = sld [smem:[#allocation24_spill]]  ;;  %s1450_s28 = smov [#allocation7]  }
  0x3f   :  { %s64_s29 = sshll.u32 %s1450_s28, 4  ;;  %s1451_s20 = smov [#allocation10]   ;;  %s65_s29 = int_to_ptr.vmem [resolvable:$true] %s64_s29 }
  0x40   :  { %s88_s1 = sshll.u32 %s1451_s20, 4  ;;  %s1339_s22 = scalar_lea.vmem %s65_s29, 16  ;;  %s89_s1 = int_to_ptr.vmem [resolvable:$true] %s88_s1 }
  0x41   :  { %p1340_p11 = scmp.ne.s32.totalorder %s65_s29, %s1339_s22  ;;  %s1343_s13 = scalar_lea.vmem %s65_s29, 32 }
  0x42   :  { %p1344_p12 = scmp.lt.s32.totalorder %s65_s29, %s65_s29  ;;  %p1345_p13 = scmp.lt.s32.totalorder %s1343_s13, %s1339_s22 }
  0x44   :  { %39 = dma.hbm_to_vmem [thread:$0]  %s1945_s27, 32, %s37_s21, [#allocation3]  }
  0x45   :  { %p1346_p0 = por %p1345_p13, %p1344_p12 }
  0x47   :  { %p1347_p1 = pnand %p1346_p0, %p1340_p11 }
  0x49   :  { %1350 = shalt.err (!%p1347_p1)
}
  0x4a   :  { %67 = dma.hbm_to_vmem [thread:$0]  %s1924_s6, 16, %s65_s29, [#allocation6]  }
  0x4b   :  { %s1359_s2 = scalar_lea.vmem %s89_s1, 16  ;;  %s1363_s8 = scalar_lea.vmem %s89_s1, 32 }
  0x4c   :  { %p1360_p2 = scmp.ne.s32.totalorder %s89_s1, %s1359_s2  ;;  %p1364_p3 = scmp.lt.s32.totalorder %s89_s1, %s89_s1 }
  0x4d   :  { %p1365_p4 = scmp.lt.s32.totalorder %s1363_s8, %s1359_s2 }
  0x4f   :  { %p1366_p5 = por %p1365_p4, %p1364_p3 }
  0x51   :  { %p1367_p6 = pnand %p1366_p5, %p1360_p2 }
  0x53   :  { %1370 = shalt.err (!%p1367_p6)
}
  0x54   :  { %91 = dma.hbm_to_vmem [thread:$0]  %s1928_s10, 16, %s89_s1, [#allocation9]  }
  0x55   :  { %s1452_s24 = smov [#allocation13]   ;;  %s1453_s3 = smov [#allocation16]  }
  0x56   :  { %s110_s25 = sshll.u32 %s1452_s24, 4  ;;  %s132_s11 = sshll.u32 %s1453_s3, 4  ;;  %s111_s25 = int_to_ptr.vmem [resolvable:$true] %s110_s25  ;;  %s133_s11 = int_to_ptr.vmem [resolvable:$true] %s132_s11 }
  0x57   :  { %s1379_s26 = scalar_lea.vmem %s111_s25, 16  ;;  %s1383_s6 = scalar_lea.vmem %s111_s25, 32 }
  0x58   :  { %p1380_p7 = scmp.ne.s32.totalorder %s111_s25, %s1379_s26  ;;  %p1384_p8 = scmp.lt.s32.totalorder %s111_s25, %s111_s25 }
  0x59   :  { %p1385_p9 = scmp.lt.s32.totalorder %s1383_s6, %s1379_s26 }
  0x5b   :  { %p1386_p10 = por %p1385_p9, %p1384_p8 }
  0x5d   :  { %p1387_p11 = pnand %p1386_p10, %p1380_p7 }
  0x5f   :  { %1390 = shalt.err (!%p1387_p11)
}
  0x60   :  { %113 = dma.hbm_to_vmem [thread:$0]  %s1930_s12, 16, %s111_s25, [#allocation12]  }
  0x61   :  { %s1399_s29 = scalar_lea.vmem %s133_s11, 16  ;;  %s1403_s10 = scalar_lea.vmem %s133_s11, 32 }
  0x62   :  { %p1400_p12 = scmp.ne.s32.totalorder %s133_s11, %s1399_s29  ;;  %p1404_p13 = scmp.lt.s32.totalorder %s133_s11, %s133_s11 }
  0x63   :  { %p1405_p0 = scmp.lt.s32.totalorder %s1403_s10, %s1399_s29 }
  0x65   :  { %p1406_p1 = por %p1405_p0, %p1404_p13 }
  0x67   :  { %p1407_p2 = pnand %p1406_p1, %p1400_p12 }
  0x69   :  { %1410 = shalt.err (!%p1407_p2)
}
  0x6a   :  { %135 = dma.hbm_to_vmem [thread:$0]  %s1932_s14, 16, %s133_s11, [#allocation15]  }
  0x6b   :  { %1431 = dma.done.wait [#allocation3], 32  }
  0x6c   :  { %1432 = vsyncadd [#allocation3], 4294967264 }
  0x6d   :  { %1433 = dma.done.wait [#allocation6], 48  }
  0x6e   :  { %1434 = vsyncadd [#allocation6], 4294967248 }
  0x6f   :  { %1435 = dma.done.wait [#allocation9], 32  }
  0x70   :  { %1436 = vsyncadd [#allocation9], 4294967264 }
  0x71   :  { %1437 = dma.done.wait [#allocation12], 528  }
  0x72   :  { %1438 = vsyncadd [#allocation12], 4294966768 }
  0x73   :  { %1439 = dma.done.wait [#allocation15], 528  }
  0x74   :  { %1440 = vsyncadd [#allocation15], 4294966768  ;;  %v1454_v0 = vmov 0.0   ;;  %vm198_vm0 = vcmask 1043456   ;;  %s1946_s13 = sld [smem:[#allocation25_spill]]  ;;  %vm194_vm1 = vcmask 293888   ;;  %v184_v49 = vlaneseq }
  0x75   :  { %269 = vmatprep.mubr.f32.mxu0 %v1454_v0  ;;  %313 = vmatprep.subr.mxu1 %v1454_v0  ;;  %s1947_s6 = sld [smem:[#allocation27_spill]]  ;;  %v171_v15 = vld [vmem:[#allocation2] sm:$0x3]  ;;  %v399_v36 = vld [vmem:[%s1923_s5 + $0x78] sm:$0xff]  ;;  %v398_v37 = vld [vmem:[%s1923_s5 + $0x70] sm:$0xff]  ;;  %vm309_vm2 = vcmask 523264  }
  0x76   :  { %v397_v38 = vld [vmem:[%s1923_s5 + $0x68] sm:$0xff]  ;;  %v396_v39 = vld [vmem:[%s1923_s5 + $0x60] sm:$0xff]  ;;  %v395_v40 = vld [vmem:[%s1923_s5 + $0x58] sm:$0xff]  ;;  %v185_v50 = vshrl.u32 %v184_v49, 7  ;;  %vm1455_vm3 = vmmov 0   ;;  %vm586_vm4 = vcmask 785408  }
  0x77   :  { %v394_v41 = vld [vmem:[%s1923_s5 + $0x50] sm:$0xff]  ;;  %v393_v42 = vld [vmem:[%s1923_s5 + $0x48] sm:$0xff]  ;;  %v392_v43 = vld [vmem:[%s1923_s5 + $0x40] sm:$0xff]  ;;  %vm672_vm5 = vcmask 261120   ;;  %vm926_vm6 = vcmask 130048   ;;  %vm1000_vm7 = vcmask 41984  }
  0x78   :  { %v391_v44 = vld [vmem:[%s1923_s5 + $0x38] sm:$0xff]  ;;  %v390_v45 = vld [vmem:[%s1923_s5 + $0x30] sm:$0xff]  ;;  %v389_v46 = vld [vmem:[%s1923_s5 + $0x28] sm:$0xff]  ;;  %v186_v51 = vsub.s32 0, %v185_v50  ;;  %v190_v53 = vsub.s32 1, %v185_v50 }
  0x79   :  { %v388_v47 = vld [vmem:[%s1923_s5 + $0x20] sm:$0xff]  ;;  %v387_v48 = vld [vmem:[%s1923_s5 + $0x18] sm:$0xff]  ;;  %v386_v62 = vld [vmem:[%s1923_s5 + $0x10] sm:$0xff] }
  0x7a   :  { %v181_v1 = vld [vmem:[%s1946_s13 + $0x48] sm:$0xf]  ;;  %v180_v2 = vld [vmem:[%s1946_s13 + $0x40] sm:$0xf]  ;;  %v179_v3 = vld [vmem:[%s1946_s13 + $0x38] sm:$0xff] }
  0x7b   :  { %1021 = vmatprep.subr.msk.mxu0 %vm198_vm0, %v181_v1  ;;  %v178_v4 = vld [vmem:[%s1946_s13 + $0x30] sm:$0xff]  ;;  %v177_v5 = vld [vmem:[%s1946_s13 + $0x28] sm:$0xff]  ;;  %v176_v6 = vld [vmem:[%s1946_s13 + $0x20] sm:$0xff] }
  0x7c   :  { %1022 = vmatpush1.msk.msra.mxu0 %vm198_vm0, %v180_v2  ;;  %v293_v7 = vld [vmem:[%s1947_s6 + $0x78] sm:$0xff]  ;;  %v292_v9 = vld [vmem:[%s1947_s6 + $0x70] sm:$0xff]  ;;  %v291_v11 = vld [vmem:[%s1947_s6 + $0x68] sm:$0xff] }
  0x7d   :  { %229 = vmatprep.subr.mxu0 %v179_v3  ;;  %v175_v8 = vld [vmem:[%s1946_s13 + $0x18] sm:$0xff]  ;;  %314 = vmatpush1.msra.mxu1 %v293_v7  ;;  %v174_v10 = vld [vmem:[%s1946_s13 + $0x10] sm:$0xff]  ;;  %v173_v12 = vld [vmem:[%s1946_s13 + $0x8] sm:$0xff] }
  0x7e   :  { %230 = vmatpush1.msra.mxu0 %v178_v4  ;;  %315 = vmatprep.subr.mxu1 %v1454_v0  ;;  %v172_v13 = vld [vmem:[%s1946_s13] sm:$0xff]  ;;  %v289_v16 = vld [vmem:[%s1947_s6 + $0x58] sm:$0xff]  ;;  %v288_v17 = vld [vmem:[%s1947_s6 + $0x50] sm:$0xff] }
  0x7f   :  { %231 = vmatprep.subr.mxu0 %v177_v5  ;;  %316 = vmatpush1.msra.mxu1 %v292_v9  ;;  %v290_v14 = vld [vmem:[%s1947_s6 + $0x60] sm:$0xff]  ;;  %v287_v18 = vld [vmem:[%s1947_s6 + $0x48] sm:$0xff]  ;;  %v285_v20 = vld [vmem:[%s1947_s6 + $0x38] sm:$0xff] }
  0x80   :  { %232 = vmatpush1.msra.mxu0 %v176_v6  ;;  %317 = vmatprep.subr.mxu1 %v1454_v0  ;;  %v286_v19 = vld [vmem:[%s1947_s6 + $0x40] sm:$0xff]  ;;  %v284_v21 = vld [vmem:[%s1947_s6 + $0x30] sm:$0xff]  ;;  %v283_v22 = vld [vmem:[%s1947_s6 + $0x28] sm:$0xff] }
  0x81   :  { %233 = vmatprep.subr.mxu0 %v175_v8  ;;  %318 = vmatpush1.msra.mxu1 %v291_v11  ;;  %v282_v23 = vld [vmem:[%s1947_s6 + $0x20] sm:$0xff]  ;;  %v281_v24 = vld [vmem:[%s1947_s6 + $0x18] sm:$0xff]  ;;  %v280_v25 = vld [vmem:[%s1947_s6 + $0x10] sm:$0xff] }
  0x82   :  { %234 = vmatpush1.msra.mxu0 %v174_v10  ;;  %319 = vmatprep.subr.mxu1 %v1454_v0  ;;  %v279_v26 = vld [vmem:[%s1947_s6 + $0x8] sm:$0xff]  ;;  %v278_v27 = vld [vmem:[%s1947_s6] sm:$0xff]  ;;  %v301_v28 = vld [vmem:[%s1947_s6 + $0xb8] sm:$0xff] }
  0x83   :  { %235 = vmatprep.subr.mxu0 %v173_v12  ;;  %320 = vmatpush1.msra.mxu1 %v290_v14  ;;  %v300_v29 = vld [vmem:[%s1947_s6 + $0xb0] sm:$0xff]  ;;  %v299_v30 = vld [vmem:[%s1947_s6 + $0xa8] sm:$0xff]  ;;  %v298_v31 = vld [vmem:[%s1947_s6 + $0xa0] sm:$0xff] }
  0x84   :  { %236 = vmatpush1.msra.mxu0 %v172_v13  ;;  %321 = vmatprep.subr.mxu1 %v1454_v0  ;;  %v297_v32 = vld [vmem:[%s1947_s6 + $0x98] sm:$0xff]  ;;  %v296_v33 = vld [vmem:[%s1947_s6 + $0x90] sm:$0xff]  ;;  %v295_v34 = vld [vmem:[%s1947_s6 + $0x88] sm:$0xff] }
  0x85   :  { %1023 = vmatmul.mubr.msk.f32.vlgmr.msra.gmra.mxu0 %vm194_vm1, %v171_v15  ;;  %322 = vmatpush1.msra.mxu1 %v289_v16  ;;  %v294_v35 = vld [vmem:[%s1947_s6 + $0x80] sm:$0xff]  ;;  %v385_v63 = vld [vmem:[%s1923_s5 + $0x8] sm:$0xff]  ;;  %v485_v7 = vld [vmem:[%s1925_s7 + $0x38] sm:$0xff] }
  0x86   :  { %1096 = vmatprep.subr.mxu0 %v1454_v0  ;;  %323 = vmatprep.subr.mxu1 %v1454_v0  ;;  %v182_v52 = vld [vmem:[#allocation5] sm:$0x3]  ;;  %v1024_v2 = vld [vmem:[%s1922_s4] ss:$0 sm:$0xff]  ;;  %v484_v8 = vld [vmem:[%s1925_s7 + $0x30] sm:$0xff]  ;;  %s1456_s4 = smov [#allocation17]  }
  0x87   :  { %324 = vmatpush1.msra.mxu1 %v288_v17  ;;  %1097 = vmatpush3.msra.mxu0 %v399_v36  ;;  %v187_v54 = vrot.slane %v182_v52, %v186_v51  ;;  %v191_v55 = vrot.slane %v182_v52, %v190_v53  ;;  %v384_v1 = vld [vmem:[%s1923_s5] sm:$0xff]  ;;  %v483_v9 = vld [vmem:[%s1925_s7 + $0x28] sm:$0xff]  ;;  %v481_v11 = vld [vmem:[%s1925_s7 + $0x18] sm:$0xff]  ;;  %s1008_s1 = sshll.u32 %s1456_s4, 4  ;;  %s1009_s1 = int_to_ptr.vmem [resolvable:$true] %s1008_s1 }
  0x88   :  { %325 = vmatprep.subr.mxu1 %v1454_v0  ;;  %1098 = vmatprep.subr.mxu0 %v1454_v0  ;;  %v482_v10 = vld [vmem:[%s1925_s7 + $0x20] sm:$0xff]  ;;  %v480_v12 = vld [vmem:[%s1925_s7 + $0x10] sm:$0xff]  ;;  %v479_v13 = vld [vmem:[%s1925_s7 + $0x8] sm:$0xff]  ;;  %p1416_p4 = scmp.lt.s32.totalorder %s1009_s1, %s1009_s1 }
  0x89   :  { %326 = vmatpush1.msra.mxu1 %v287_v18  ;;  %1099 = vmatpush3.msra.mxu0 %v398_v37  ;;  %v478_v14 = vld [vmem:[%s1925_s7] sm:$0xff]  ;;  %v578_v15 = vld [vmem:[%s1927_s9 + $0x58] sm:$0xff]  ;;  %v577_v16 = vld [vmem:[%s1927_s9 + $0x50] sm:$0xff] }
  0x8a   :  { %327 = vmatprep.subr.mxu1 %v1454_v0  ;;  %1100 = vmatprep.subr.mxu0 %v1454_v0  ;;  %v576_v17 = vld [vmem:[%s1927_s9 + $0x48] sm:$0xff]  ;;  %v575_v18 = vld [vmem:[%s1927_s9 + $0x40] sm:$0xff]  ;;  %v835_v50 = vld [vmem:[%s1933_s15 + $0x18] sm:$0xff] }
  0x8b   :  { %328 = vmatpush1.msra.mxu1 %v286_v19  ;;  %1101 = vmatpush3.msra.mxu0 %v397_v38  ;;  %v574_v19 = vld [vmem:[%s1927_s9 + $0x38] sm:$0xff]  ;;  %v747_v49 = vld [vmem:[#allocation14] sm:$0xff]  ;;  %v1031_v51 = vld [vmem:[#allocation13] ss:$0 sm:$0xff] }
  0x8c   :  { %329 = vmatprep.subr.mxu1 %v1454_v0  ;;  %1102 = vmatprep.subr.mxu0 %v1454_v0  ;;  %v663_v38 = vld [vmem:[#allocation11 + $0x10] sm:$0xff] }
  0x8d   :  { %330 = vmatpush1.msra.mxu1 %v285_v20  ;;  %1103 = vmatpush3.msra.mxu0 %v396_v39  ;;  %v573_v20 = vld [vmem:[%s1927_s9 + $0x30] sm:$0xff] }
  0x8e   :  { %331 = vmatprep.subr.mxu1 %v1454_v0  ;;  %1104 = vmatprep.subr.mxu0 %v1454_v0  ;;  %v662_v39 = vld [vmem:[#allocation11 + $0x8] sm:$0xff] }
  0x8f   :  { %332 = vmatpush1.msra.mxu1 %v284_v21  ;;  %1105 = vmatpush3.msra.mxu0 %v395_v40  ;;  %v572_v21 = vld [vmem:[%s1927_s9 + $0x28] sm:$0xff] }
  0x90   :  { %333 = vmatprep.subr.mxu1 %v1454_v0  ;;  %1106 = vmatprep.subr.mxu0 %v1454_v0  ;;  %v661_v40 = vld [vmem:[#allocation11] sm:$0xff] }
  0x91   :  { %334 = vmatpush1.msra.mxu1 %v283_v22  ;;  %1107 = vmatpush3.msra.mxu0 %v394_v41  ;;  %v571_v22 = vld [vmem:[%s1927_s9 + $0x20] sm:$0xff]  ;;  %v1029_v41 = vld [vmem:[#allocation10] ss:$0 sm:$0xff] }
  0x92   :  { %335 = vmatprep.subr.mxu1 %v1454_v0  ;;  %1108 = vmatprep.subr.mxu0 %v1454_v0 }
  0x93   :  { %336 = vmatpush1.msra.mxu1 %v282_v23  ;;  %1109 = vmatpush3.msra.mxu0 %v393_v42  ;;  %v570_v23 = vld [vmem:[%s1927_s9 + $0x18] sm:$0xff] }
  0x94   :  { %337 = vmatprep.subr.mxu1 %v1454_v0  ;;  %1110 = vmatprep.subr.mxu0 %v1454_v0 }
  0x95   :  { %338 = vmatpush1.msra.mxu1 %v281_v24  ;;  %1111 = vmatpush3.msra.mxu0 %v392_v43  ;;  %v1026_v24 = vld [vmem:[#allocation7] ss:$0 sm:$0xff] }
  0x96   :  { %339 = vmatprep.subr.mxu1 %v1454_v0  ;;  %1112 = vmatprep.subr.mxu0 %v1454_v0 }
  0x97   :  { %340 = vmatpush1.msra.mxu1 %v280_v25  ;;  %1113 = vmatpush3.msra.mxu0 %v391_v44 }
  0x98   :  { %341 = vmatprep.subr.mxu1 %v1454_v0  ;;  %1114 = vmatprep.subr.mxu0 %v1454_v0 }
  0x99   :  { %342 = vmatpush1.msra.mxu1 %v279_v26  ;;  %1115 = vmatpush3.msra.mxu0 %v390_v45 }
  0x9a   :  { %343 = vmatprep.subr.mxu1 %v1454_v0  ;;  %1116 = vmatprep.subr.mxu0 %v1454_v0 }
  0x9b   :  { %344 = vmatpush1.msra.mxu1 %v278_v27  ;;  %1117 = vmatpush3.msra.mxu0 %v389_v46  ;;  %v750_v46 = vld [vmem:[#allocation14 + $0x18] sm:$0xff] }
  0x9c   :  { %361 = vmatprep.subr.mxu1 %v1454_v0  ;;  %1118 = vmatprep.subr.mxu0 %v1454_v0 }
  0x9d   :  { %362 = vmatpush2.msra.mxu1 %v301_v28  ;;  %1119 = vmatpush3.msra.mxu0 %v388_v47  ;;  %v749_v47 = vld [vmem:[#allocation14 + $0x10] sm:$0xff] }
  0x9e   :  { %363 = vmatprep.subr.mxu1 %v1454_v0  ;;  %1120 = vmatprep.subr.mxu0 %v1454_v0 }
  0x9f   :  { %364 = vmatpush2.msra.mxu1 %v300_v29  ;;  %1121 = vmatpush3.msra.mxu0 %v387_v48  ;;  %v569_v29 = vld [vmem:[%s1927_s9 + $0x10] sm:$0xff] }
  0xa0   :  { %365 = vmatprep.subr.mxu1 %v1454_v0  ;;  %1122 = vmatprep.subr.mxu0 %v1454_v0  ;;  %v748_v48 = vld [vmem:[#allocation14 + $0x8] sm:$0xff] }
  0xa1   :  { %366 = vmatpush2.msra.mxu1 %v299_v30  ;;  %1123 = vmatpush3.msra.mxu0 %v386_v62  ;;  %v568_v30 = vld [vmem:[%s1927_s9 + $0x8] sm:$0xff] }
  0xa2   :  { %367 = vmatprep.subr.mxu1 %v1454_v0  ;;  %1124 = vmatprep.subr.mxu0 %v1454_v0 }
  0xa3   :  { %368 = vmatpush2.msra.mxu1 %v298_v31  ;;  %1125 = vmatpush3.msra.mxu0 %v385_v63  ;;  %v567_v31 = vld [vmem:[%s1927_s9] sm:$0xff] }
  0xa4   :  { %369 = vmatprep.subr.mxu1 %v1454_v0  ;;  %1126 = vmatprep.subr.mxu0 %v1454_v0 }
  0xa5   :  { %370 = vmatpush2.msra.mxu1 %v297_v32  ;;  %1127 = vmatpush3.msra.mxu0 %v384_v1  ;;  %v664_v32 = vld [vmem:[#allocation11 + $0x18] sm:$0xff] }
  0xa6   :  { %371 = vmatprep.subr.mxu1 %v1454_v0  ;;  %1128 = vmatprep.mubr.msk.f32.mxu0 %vm1455_vm3, %v1454_v0  ;;  %v918_v1 = vld [vmem:[%s1935_s17 + $0x8] sm:$0xff] }
  0xa7   :  { %372 = vmatpush2.msra.mxu1 %v296_v33  ;;  %1131 = vmatprep.subr.mxu0 %v1454_v0  ;;  %v1027_v33 = vld [vmem:[#allocation8] ss:$0 sm:$0xff] }
  0xa8   :  { %373 = vmatprep.subr.mxu1 %v1454_v0 }
  0xa9   :  { %374 = vmatpush2.msra.mxu1 %v295_v34 }
  0xaa   :  { %375 = vmatprep.subr.mxu1 %v1454_v0 }
  0xab   :  { %376 = vmatpush2.msra.mxu1 %v294_v35 }
  0xac   :  { %1150 = vmatprep.subr.mxu1 %v1454_v0 }
 0x145   :  { %v271_v56 = vpop.f32.mrf.mxu0 }
 0x146   :  { %v272_v57 = vadd.f32 %v271_v56, %v187_v54  ;;  %v834_v56 = vld [vmem:[%s1933_s15 + $0x10] sm:$0xff] }
 0x147   :  { %v273_v58 = vpop.f32.mrf.mxu0 }
 0x148   :  { %v274_v59 = vadd.f32 %v273_v58, %v191_v55  ;;  %v276_v61 = vmax.f32 %v272_v57, 0.0  ;;  %v833_v57 = vld [vmem:[%s1933_s15 + $0x8] sm:$0xff]  ;;  %v832_v58 = vld [vmem:[%s1933_s15] sm:$0xff] }
 0x14a   :  { %v277_v60 = vmax.f32 %v274_v59, 0.0  ;;  %v1033_v59 = vld [vmem:[#allocation16] ss:$0 sm:$0xff] }
 0x14c   :  { %1025 = vmatprep.mubr.msk.f32.mxu1 %vm309_vm2, %v277_v60 }
 0x14d   :  { %378 = vmatmul.mubr.f32.vlgmr.msra.gmra.mxu1 %v276_v61 }
 0x14e   :  { %1174 = vmatprep.mubr.msk.f32.mxu1 %vm1455_vm3, %v1454_v0  ;;  %1151 = vmatpush3.msra.mxu1 %v578_v15 }
 0x14f   :  { %1152 = vmatprep.subr.mxu1 %v1454_v0 }
 0x150   :  { %1153 = vmatpush3.msra.mxu1 %v577_v16 }
 0x151   :  { %1154 = vmatprep.subr.mxu1 %v1454_v0 }
 0x152   :  { %1155 = vmatpush3.msra.mxu1 %v576_v17 }
 0x153   :  { %1156 = vmatprep.subr.mxu1 %v1454_v0 }
 0x154   :  { %1157 = vmatpush3.msra.mxu1 %v575_v18 }
 0x155   :  { %1158 = vmatprep.subr.mxu1 %v1454_v0 }
 0x156   :  { %1159 = vmatpush3.msra.mxu1 %v574_v19 }
 0x157   :  { %1160 = vmatprep.subr.mxu1 %v1454_v0 }
 0x158   :  { %1161 = vmatpush3.msra.mxu1 %v573_v20 }
 0x159   :  { %1162 = vmatprep.subr.mxu1 %v1454_v0 }
 0x15a   :  { %1163 = vmatpush3.msra.mxu1 %v572_v21 }
 0x15b   :  { %1164 = vmatprep.subr.mxu1 %v1454_v0 }
 0x15c   :  { %1165 = vmatpush3.msra.mxu1 %v571_v22 }
 0x15d   :  { %1166 = vmatprep.subr.mxu1 %v1454_v0 }
 0x15e   :  { %1167 = vmatpush3.msra.mxu1 %v570_v23 }
 0x15f   :  { %1168 = vmatprep.subr.mxu1 %v1454_v0 }
 0x160   :  { %1169 = vmatpush3.msra.mxu1 %v569_v29 }
 0x161   :  { %1170 = vmatprep.subr.mxu1 %v1454_v0 }
 0x162   :  { %1171 = vmatpush3.msra.mxu1 %v568_v30 }
 0x163   :  { %1172 = vmatprep.subr.mxu1 %v1454_v0 }
 0x164   :  { %1173 = vmatpush3.msra.mxu1 %v567_v31 }
 0x165   :  { %1199 = vmatprep.subr.mxu1 %v1454_v0 }
 0x20d   :  { %v379_v3 = vpop.f32.mrf.mxu1 }
 0x20e   :  { %v380_v4 = vadd.f32 %v1024_v2, %v379_v3  ;;  %v917_v2 = vld [vmem:[%s1935_s17] sm:$0xff]  ;;  %s1411_s17 = scalar_lea.vmem %s1009_s1, 32 }
 0x20f   :  { %v381_v5 = vpop.f32.mrf.mxu1  ;;  %v1035_v3 = vld [vmem:[%s1934_s16] ss:$0 sm:$0xff]  ;;  %p1412_p3 = scmp.ne.s32.totalorder %s1009_s1, %s1411_s17  ;;  %p1417_p5 = scmp.lt.s32.totalorder %s1411_s17, %s1411_s17 }
 0x210   :  { %v383_v6 = vmax.f32 %v380_v4, 0.0 }
 0x211   :  { %p1418_p6 = por %p1417_p5, %p1416_p4 }
 0x212   :  { %1129 = vmatmul.mubr.f32.vlgmr.msra.gmra.mxu0 %v383_v6 }
 0x213   :  { %1132 = vmatpush3.msra.mxu0 %v485_v7  ;;  %1147 = vmatprep.mubr.msk.f32.mxu0 %vm1455_vm3, %v1454_v0  ;;  %p1419_p7 = pnand %p1418_p6, %p1412_p3 }
 0x214   :  { %1133 = vmatprep.subr.mxu0 %v1454_v0 }
 0x215   :  { %1134 = vmatpush3.msra.mxu0 %v484_v8  ;;  %v1037_v8 = vld [vmem:[%s1936_s18] ss:$0 sm:$0xff] }
 0x216   :  { %1135 = vmatprep.subr.mxu0 %v1454_v0 }
 0x217   :  { %1136 = vmatpush3.msra.mxu0 %v483_v9 }
 0x218   :  { %1137 = vmatprep.subr.mxu0 %v1454_v0 }
 0x219   :  { %1138 = vmatpush3.msra.mxu0 %v482_v10 }
 0x21a   :  { %1139 = vmatprep.subr.mxu0 %v1454_v0 }
 0x21b   :  { %1140 = vmatpush3.msra.mxu0 %v481_v11 }
 0x21c   :  { %1141 = vmatprep.subr.mxu0 %v1454_v0 }
 0x21d   :  { %1142 = vmatpush3.msra.mxu0 %v480_v12 }
 0x21e   :  { %1143 = vmatprep.subr.mxu0 %v1454_v0 }
 0x21f   :  { %1144 = vmatpush3.msra.mxu0 %v479_v13 }
 0x220   :  { %1145 = vmatprep.subr.mxu0 %v1454_v0 }
 0x221   :  { %1146 = vmatpush3.msra.mxu0 %v478_v14 }
 0x222   :  { %1177 = vmatprep.subr.mxu0 %v1454_v0 }
 0x2d2   :  { %v473_v25 = vpop.f32.mrf.mxu0 }
 0x2d3   :  { %v474_v26 = vadd.f32 %v1026_v24, %v473_v25 }
 0x2d4   :  { %v1130_v27 = vpop.f32.mrf.mxu0 }
 0x2d5   :  { %v477_v28 = vmax.f32 %v474_v26, 0.0 }
 0x2d7   :  { %1148 = vmatmul.mubr.msk.f32.vlgmr.msra.gmra.mxu0 %vm309_vm2, %v477_v28 }
 0x2d8   :  { %1185 = vmatprep.mubr.msk.f32.mxu0 %vm1455_vm3, %v1454_v0  ;;  %1178 = vmatpush3.msra.mxu0 %v664_v32 }
 0x2d9   :  { %1179 = vmatprep.subr.mxu0 %v1454_v0 }
 0x2da   :  { %1180 = vmatpush3.msra.mxu0 %v663_v38 }
 0x2db   :  { %1181 = vmatprep.subr.mxu0 %v1454_v0 }
 0x2dc   :  { %1182 = vmatpush3.msra.mxu0 %v662_v39 }
 0x2dd   :  { %1183 = vmatprep.subr.mxu0 %v1454_v0 }
 0x2de   :  { %1184 = vmatpush3.msra.mxu0 %v661_v40 }
 0x2df   :  { %1188 = vmatprep.subr.mxu0 %v1454_v0 }
 0x397   :  { %v562_v34 = vpop.f32.mrf.mxu0 }
 0x398   :  { %v563_v35 = vadd.f32 %v1027_v33, %v562_v34 }
 0x399   :  { %v1149_v36 = vpop.f32.mrf.mxu0 }
 0x39a   :  { %v566_v37 = vmax.f32 %v563_v35, 0.0 }
 0x39c   :  { %1175 = vmatmul.mubr.msk.f32.vlgmr.msra.gmra.mxu1 %vm586_vm4, %v566_v37 }
 0x39d   :  { %1207 = vmatprep.mubr.msk.f32.mxu1 %vm1455_vm3, %v1454_v0  ;;  %1200 = vmatpush3.msra.mxu1 %v835_v50 }
 0x39e   :  { %1201 = vmatprep.subr.mxu1 %v1454_v0 }
 0x39f   :  { %1202 = vmatpush3.msra.mxu1 %v834_v56 }
 0x3a0   :  { %1203 = vmatprep.subr.mxu1 %v1454_v0 }
 0x3a1   :  { %1204 = vmatpush3.msra.mxu1 %v833_v57 }
 0x3a2   :  { %1205 = vmatprep.subr.mxu1 %v1454_v0 }
 0x3a3   :  { %1206 = vmatpush3.msra.mxu1 %v832_v58 }
 0x45c   :  { %v656_v42 = vpop.f32.mrf.mxu1 }
 0x45d   :  { %v657_v43 = vadd.f32 %v1029_v41, %v656_v42 }
 0x45e   :  { %v1176_v44 = vpop.f32.mrf.mxu1 }
 0x45f   :  { %v660_v45 = vmax.f32 %v657_v43, 0.0 }
 0x461   :  { %1186 = vmatmul.mubr.msk.f32.vlgmr.msra.gmra.mxu0 %vm672_vm5, %v660_v45 }
 0x462   :  { %1189 = vmatpush3.msra.mxu0 %v750_v46  ;;  %1196 = vmatprep.mubr.msk.f32.mxu0 %vm1455_vm3, %v1454_v0 }
 0x463   :  { %1190 = vmatprep.subr.mxu0 %v1454_v0 }
 0x464   :  { %1191 = vmatpush3.msra.mxu0 %v749_v47 }
 0x465   :  { %1192 = vmatprep.subr.mxu0 %v1454_v0 }
 0x466   :  { %1193 = vmatpush3.msra.mxu0 %v748_v48 }
 0x467   :  { %1194 = vmatprep.subr.mxu0 %v1454_v0 }
 0x468   :  { %1195 = vmatpush3.msra.mxu0 %v747_v49 }
 0x469   :  { %1210 = vmatprep.subr.mxu0 %v1454_v0 }
 0x521   :  { %v742_v52 = vpop.f32.mrf.mxu0 }
 0x522   :  { %v743_v53 = vadd.f32 %v1031_v51, %v742_v52 }
 0x523   :  { %v1187_v54 = vpop.f32.mrf.mxu0 }
 0x524   :  { %v746_v55 = vmax.f32 %v743_v53, 0.0 }
 0x526   :  { %1197 = vmatmul.mubr.msk.f32.vlgmr.msra.gmra.mxu0 %vm672_vm5, %v746_v55 }
 0x527   :  { %1214 = vmatprep.mubr.msk.f32.mxu0 %vm1455_vm3, %v1454_v0  ;;  %1211 = vmatpush3.msra.mxu0 %v918_v1 }
 0x528   :  { %1212 = vmatprep.subr.mxu0 %v1454_v0 }
 0x529   :  { %1213 = vmatpush3.msra.mxu0 %v917_v2 }
 0x5e6   :  { %v827_v60 = vpop.f32.mrf.mxu0 }
 0x5e7   :  { %v828_v61 = vadd.f32 %v1033_v59, %v827_v60 }
 0x5e8   :  { %v1198_v62 = vpop.f32.mrf.mxu0 }
 0x5e9   :  { %v831_v63 = vmax.f32 %v828_v61, 0.0 }
 0x5eb   :  { %1208 = vmatmul.mubr.msk.f32.vlgmr.msra.gmra.mxu1 %vm672_vm5, %v831_v63 }
 0x6ab   :  { %v912_v4 = vpop.f32.mrf.mxu1 }
 0x6ac   :  { %v913_v5 = vadd.f32 %v1035_v3, %v912_v4 }
 0x6ad   :  { %v1209_v6 = vpop.f32.mrf.mxu1 }
 0x6ae   :  { %v916_v7 = vmax.f32 %v913_v5, 0.0 }
 0x6b0   :  { %1215 = vmatmul.mubr.msk.f32.vlgmr.msra.gmra.mxu0 %vm926_vm6, %v916_v7 }
 0x770   :  { %v996_v0 = vpop.f32.mrf.mxu0 }
 0x771   :  { %v997_v9 = vadd.f32 %v1037_v8, %v996_v0 }
 0x772   :  { %v1216_v10 = vpop.f32.mrf.mxu0 }
 0x773   :  { %1001 = vst.msk [vmem:[#allocation17] sm:$0x3] %vm1000_vm7, %v997_v9 }
 0x774   :  { %1422 = shalt.err (!%p1419_p7)
}
 0x775   :  { %1011 = dma.vmem_to_hbm [thread:$0]  %s1009_s1, 32, %s1937_s19, [#allocation4]  }
 0x776   :  { %1441 = dma.done.wait [#allocation4], 32  }
 0x777   :  { %1442 = vsyncadd [#allocation4], 4294967264 }
 0x778   :  { %1015 = vsyncpa [#allocation3], 1 }
 0x779   :  { %1016 = vsyncpa [#allocation6], 1 }
 0x77a   :  { %1017 = vsyncpa [#allocation9], 1 }
 0x77b   :  { %1018 = vsyncpa [#allocation12], 1 }
 0x77c   :  { %1019 = vsyncpa [#allocation15], 1 }
 0x77d   :  { %1020 = vsyncpa [#allocation4], 1 }

</bundles_post_ra>
